<compile_context>
chip_gen: v5e
topology: v5e:2x2
jax: 0.10.0
libtpu: 0.0.40
codegen_flags: <defaults>
</compile_context>

<pallas_src>
import math
import numpy as np
import jax
import jax.numpy as jnp
from jax.experimental import pallas as pl
from jax.experimental.pallas import tpu as pltpu


# --------------------------- folded Haar matrices ---------------------------

def _build_g_matrices(h, w, block_diag, dtype):
    """Folded Haar reconstruction matrices with exact +/-0.5 entries.

    Returns (4, K, Nout):
      block_diag=False: K = w,   Nout = 2W   -> acts on (rows, w) tiles; each output
                        row packs [even output row | odd output row] (2W columns).
      block_diag=True : K = h*w, Nout = H*W  -> acts on whole-channel (rows, h*w)
                        tiles; each output row is the full NCHW-contiguous channel
                        image (lane-dense even when 2W < 128).
    """
    W = 2 * w
    g = np.zeros((4, w, 2 * W), np.float64)
    for j in range(w):
        e0, e1 = 2 * j, 2 * j + 1            # columns of output row 2i
        o0, o1 = W + 2 * j, W + 2 * j + 1    # columns of output row 2i+1
        g[0, j, [e0, e1, o0, o1]] = [0.5, 0.5, 0.5, 0.5]      # LL
        g[1, j, [e0, e1, o0, o1]] = [0.5, -0.5, 0.5, -0.5]    # LH
        g[2, j, [e0, e1, o0, o1]] = [0.5, 0.5, -0.5, -0.5]    # HL
        g[3, j, [e0, e1, o0, o1]] = [0.5, -0.5, -0.5, 0.5]    # HH
    if block_diag:
        eye = np.eye(h)
        g = np.stack([np.kron(eye, g[s]) for s in range(4)], axis=0)  # (4, h*w, h*2W)
    return jnp.asarray(g, dtype)


# --------------------------------- kernels ----------------------------------

def _idwt_kernel(g_ref, ll_ref, lh_ref, hl_ref, hh_ref, out_ref):
    """out = LL@G0 + LH@G1 + HL@G2 + HH@G3 ; f32 accumulation, one full-tile store."""
    acc = jnp.dot(ll_ref[...], g_ref[0], preferred_element_type=jnp.float32)
    acc = acc + jnp.dot(lh_ref[...], g_ref[1], preferred_element_type=jnp.float32)
    acc = acc + jnp.dot(hl_ref[...], g_ref[2], preferred_element_type=jnp.float32)
    acc = acc + jnp.dot(hh_ref[...], g_ref[3], preferred_element_type=jnp.float32)
    out_ref[...] = acc.astype(out_ref.dtype)


def _fm_copy_kernel(idwt_buf_ref, fm_ref, out_ref):
    """Copy feature_map blocks into the tail of the (aliased) output buffer."""
    del idwt_buf_ref  # aliased HBM ref; the IDWT region is preserved via aliasing
    out_ref[...] = fm_ref[...]


# ------------------------------ block pickers -------------------------------

def _sublane(dtype):
    # f32 -> 8, bf16 -> 16, int8 -> 32 row multiples (avoid sublane relayouts).
    return max(8, 8 * (4 // jnp.dtype(dtype).itemsize))


def _round_up(x, m):
    return -(-x // m) * m


def _aligned_divisors(n, step):
    return [r for r in range(step, n + 1, step) if n % r == 0]


def _vmem_budgets():
    """One consistent number for picker budget and vmem_limit_bytes (v7x-safe)."""
    cap = 64 << 20  # assume the smallest (v7x per-TC VMEM) if the query fails
    try:
        info = pltpu.get_tpu_info()
        cap_q = int(getattr(info, "vmem_capacity_bytes", 0))
        if cap_q > 0:
            cap = cap_q
    except Exception:
        pass
    vmem_limit = int(min(0.75 * cap, 96 << 20))   # v7x: 48 MiB ; v5e/v6e: 96 MiB
    return vmem_limit // 2, vmem_limit            # (working-set budget, limit)


def _choose_block(rows, cands, footprint, budget, n_batch):
    if not cands:
        return None
    fitting = [r for r in cands if footprint(r) <= budget] or [min(cands)]
    r = max(fitting)
    if n_batch * (rows // r) < 2:  # keep >= 2 grid steps so v7x megacore has work
        better = [c for c in fitting if n_batch * (rows // c) >= 2]
        if better:
            r = max(better)
    return r


# --------------------------------- wrapper -----------------------------------

def my_upsampling_idwt(LL, LH, HL, HH, feature_map):
    N, C, h, w = LL.shape
    H, W = 2 * h, 2 * w
    assert LH.shape == LL.shape and HL.shape == LL.shape and HH.shape == LL.shape
    assert feature_map.shape[0] == N and feature_map.shape[2:] == (H, W)
    C2 = feature_map.shape[1]
    dtype = LL.dtype
    isz = jnp.dtype(dtype).itemsize
    sub = _sublane(dtype)
    budget, vmem_limit = _vmem_budgets()
    g_dtype = dtype if jnp.issubdtype(jnp.dtype(dtype), jnp.floating) else jnp.float32
    g_isz = jnp.dtype(g_dtype).itemsize

    # Layout selection: lane-dense whole-channel path for small spatial sizes,
    # row-folded path (channels*rows folded into M) for large W.
    small = (2 * W < 128) and (4 * h * w * h * 2 * W * g_isz <= (4 << 20))
    if small:
        K, Nout = h * w, h * 2 * W                    # Nout == H * W
        rows_rec, rows_fm = C, C2
        subviews = [a.reshape(N, C, h * w) for a in (LL, LH, HL, HH)]
        fm_view = feature_map.reshape(N, C2, H * W).astype(dtype)
    else:
        K, Nout = w, 2 * W
        rows_rec, rows_fm = C * h, C2 * h
        subviews = [a.reshape(N, C * h, w) for a in (LL, LH, HL, HH)]
        fm_view = feature_map.reshape(N, C2 * h, 2 * W).astype(dtype)
    G = _build_g_matrices(h, w, block_diag=small, dtype=g_dtype)

    kp, nop = _round_up(K, 128), _round_up(Nout, 128)   # lane padding to 128
    g_bytes = 2 * 4 * _round_up(K, 8) * nop * g_isz     # resident constant (2 bufs)

    def idwt_footprint(r):
        rp = _round_up(r, 8)
        return (4 * 2 * rp * kp * isz          # 4 subband blocks, double-buffered
                + 2 * rp * nop * isz           # output block, double-buffered
                + rp * nop * 4                 # f32 accumulator
                + g_bytes)

    r_aligned = _choose_block(rows_rec, _aligned_divisors(rows_rec, sub),
                              idwt_footprint, budget, N)

    def copy_footprint(r):
        rp = _round_up(r, 8)
        return 4 * rp * nop * isz              # in + out blocks, double-buffered

    rf = _choose_block(rows_fm, _aligned_divisors(math.gcd(rows_rec, rows_fm), sub),
                       copy_footprint, budget, N)

    fuse = (r_aligned is not None) and (rf is not None)
    R = r_aligned if r_aligned is not None else rows_rec
    rows_total = rows_rec + rows_fm if fuse else rows_rec

    g_spec = pl.BlockSpec(G.shape, lambda n, rb: (0, 0, 0))          # resident constant
    sub_spec = pl.BlockSpec((None, R, K), lambda n, rb: (n, rb, 0))
    out_spec = pl.BlockSpec((None, R, Nout), lambda n, rb: (n, rb, 0))

    buf = pl.pallas_call(
        _idwt_kernel,
        out_shape=jax.ShapeDtypeStruct((N, rows_total, Nout), dtype),
        grid=(N, rows_rec // R),
        in_specs=[g_spec, sub_spec, sub_spec, sub_spec, sub_spec],
        out_specs=out_spec,
        compiler_params=pltpu.CompilerParams(
            dimension_semantics=("parallel", "parallel"),
            vmem_limit_bytes=vmem_limit),
    )(G, *subviews)

    if fuse:
        # In-place feature_map writeback into the tail of the same HBM buffer:
        # no re-read / re-write of the reconstructed IDWT region.
        rec_blocks = rows_rec // rf
        buf = pl.pallas_call(
            _fm_copy_kernel,
            out_shape=jax.ShapeDtypeStruct((N, rows_total, Nout), dtype),
            grid=(N, rows_fm // rf),
            in_specs=[pl.BlockSpec(memory_space=pl.ANY),
                      pl.BlockSpec((None, rf, Nout), lambda n, rb: (n, rb, 0))],
            out_specs=pl.BlockSpec((None, rf, Nout),
                                   lambda n, rb: (n, rec_blocks + rb, 0)),
            input_output_aliases={0: 0},
            compiler_params=pltpu.CompilerParams(
                dimension_semantics=("parallel", "parallel"),
                vmem_limit_bytes=vmem_limit),
        )(buf, fm_view)
        # Both layouts are bit-contiguous with NCHW, so this reshape is free.
        return buf.reshape(N, C + C2, H, W)

    # TODO(synk): when C / C2 share no sublane-aligned common divisor we fall back to a
    # plain concatenate (one extra HBM pass over rec) instead of the in-place fusion.
    rec = buf.reshape(N, C, H, W)
    return jnp.concatenate([rec, feature_map.astype(dtype)], axis=1)


# ----------------------------- reference & test ------------------------------

def reference_upsampling_idwt(LL, LH, HL, HH, feature_map):
    """Pure-JAX reference mirroring torch IDWTFunction_2D (haar) + torch.cat."""
    N, C, h, w = LL.shape
    r = 1.0 / np.sqrt(2.0)
    H, W = 2 * h, 2 * w
    ML1 = np.zeros((w, W)); MH1 = np.zeros((w, W))
    for j in range(w):
        ML1[j, 2 * j:2 * j + 2] = [r, r]; MH1[j, 2 * j:2 * j + 2] = [r, -r]
    ML0 = np.zeros((h, H)); MH0 = np.zeros((h, H))
    for i in range(h):
        ML0[i, 2 * i:2 * i + 2] = [r, r]; MH0[i, 2 * i:2 * i + 2] = [r, -r]
    ml1 = jnp.asarray(ML1, jnp.float32); mh1 = jnp.asarray(MH1, jnp.float32)
    ml0t = jnp.asarray(ML0.T, jnp.float32); mh0t = jnp.asarray(MH0.T, jnp.float32)
    L = jnp.matmul(LL.astype(jnp.float32), ml1) + jnp.matmul(LH.astype(jnp.float32), mh1)
    Hb = jnp.matmul(HL.astype(jnp.float32), ml1) + jnp.matmul(HH.astype(jnp.float32), mh1)
    rec = (jnp.einsum('Hk,nckW->ncHW', ml0t, L)
           + jnp.einsum('Hk,nckW->ncHW', mh0t, Hb)).astype(LL.dtype)
    return jnp.concatenate([rec, feature_map], axis=1)


if __name__ == "__main__":
    fn = jax.jit(my_upsampling_idwt)
    configs = [
        # (N, C, C2, h, w)
        (2, 8, 8, 8, 8),    # small lane-dense path + fused feature_map writeback
        (2, 2, 4, 8, 64),   # large-W path (2W >= 128) + fused feature_map writeback
        (1, 4, 3, 8, 8),    # awkward channel counts -> concatenate fallback
    ]
    key = jax.random.PRNGKey(0)
    for (N, C, C2, h, w) in configs:
        key, k1, k2, k3, k4, k5 = jax.random.split(key, 6)
        H, W = 2 * h, 2 * w
        LL = jax.random.normal(k1, (N, C, h, w), jnp.float32)
        LH = jax.random.normal(k2, (N, C, h, w), jnp.float32)
        HL = jax.random.normal(k3, (N, C, h, w), jnp.float32)
        HH = jax.random.normal(k4, (N, C, h, w), jnp.float32)
        fm = jax.random.normal(k5, (N, C2, H, W), jnp.float32)

        out = jax.block_until_ready(fn(LL, LH, HL, HH, fm))
        ref = reference_upsampling_idwt(LL, LH, HL, HH, fm)
        assert out.shape == (N, C + C2, H, W), out.shape
        np.testing.assert_allclose(np.asarray(out), np.asarray(ref),
                                   atol=1e-5, rtol=1e-5)
    print("KERNEL_OK")
</pallas_src>

<mosaic_0001>
module attributes {stable_mosaic.version = 11 : i64} {
  func.func @_idwt_kernel(%arg0: i32, %arg1: i32, %arg2: memref<4x64x256xf32, #tpu.memory_space<vmem>>, %arg3: memref<1x8x64xf32, #tpu.memory_space<vmem>>, %arg4: memref<1x8x64xf32, #tpu.memory_space<vmem>>, %arg5: memref<1x8x64xf32, #tpu.memory_space<vmem>>, %arg6: memref<1x8x64xf32, #tpu.memory_space<vmem>>, %arg7: memref<1x8x256xf32, #tpu.memory_space<vmem>>) attributes {dimension_semantics = [#tpu.dimension_semantics<parallel>, #tpu.dimension_semantics<parallel>], iteration_bounds = array<i64: 2, 1>, scalar_prefetch = 0 : i64, scratch_operands = 0 : i64, tpu.core_type = #tpu.core_type<tc>, window_params = [{pipeline_mode = #tpu.pipeline_mode<synchronous>, transform_indices = @transform_0, window_bounds = array<i64: 4, 64, 256>}, {transform_indices = @transform_1, window_bounds = array<i64: 1, 8, 64>}, {transform_indices = @transform_2, window_bounds = array<i64: 1, 8, 64>}, {transform_indices = @transform_3, window_bounds = array<i64: 1, 8, 64>}, {transform_indices = @transform_4, window_bounds = array<i64: 1, 8, 64>}, {transform_indices = @transform_5, window_bounds = array<i64: 1, 8, 256>}]} {
    %c0 = arith.constant 0 : index
    %c0_0 = arith.constant 0 : index
    %c0_1 = arith.constant 0 : index
    %0 = vector.load %arg3[%c0, %c0_0, %c0_1] : memref<1x8x64xf32, #tpu.memory_space<vmem>>, vector<1x8x64xf32>
    %1 = vector.shape_cast %0 : vector<1x8x64xf32> to vector<8x64xf32>
    %c0_2 = arith.constant 0 : index
    %c0_3 = arith.constant 0 : index
    %c0_4 = arith.constant 0 : index
    %2 = vector.load %arg2[%c0_2, %c0_3, %c0_4] : memref<4x64x256xf32, #tpu.memory_space<vmem>>, vector<1x64x256xf32>
    %3 = vector.shape_cast %2 : vector<1x64x256xf32> to vector<64x256xf32>
    %cst = arith.constant dense<0.000000e+00> : vector<8x256xf32>
    %4 = tpu.matmul %1, %3, %cst {dimension_numbers = #tpu.dot_dimension_numbers<[1], [0], [0], [1], [0, 0, 1, 1], [], []>} : vector<8x64xf32>, vector<64x256xf32>, vector<8x256xf32> -> vector<8x256xf32>
    %c0_5 = arith.constant 0 : index
    %c0_6 = arith.constant 0 : index
    %c0_7 = arith.constant 0 : index
    %5 = vector.load %arg4[%c0_5, %c0_6, %c0_7] : memref<1x8x64xf32, #tpu.memory_space<vmem>>, vector<1x8x64xf32>
    %6 = vector.shape_cast %5 : vector<1x8x64xf32> to vector<8x64xf32>
    %c1 = arith.constant 1 : index
    %c0_8 = arith.constant 0 : index
    %c0_9 = arith.constant 0 : index
    %7 = vector.load %arg2[%c1, %c0_8, %c0_9] : memref<4x64x256xf32, #tpu.memory_space<vmem>>, vector<1x64x256xf32>
    %8 = vector.shape_cast %7 : vector<1x64x256xf32> to vector<64x256xf32>
    %cst_10 = arith.constant dense<0.000000e+00> : vector<8x256xf32>
    %9 = tpu.matmul %6, %8, %cst_10 {dimension_numbers = #tpu.dot_dimension_numbers<[1], [0], [0], [1], [0, 0, 1, 1], [], []>} : vector<8x64xf32>, vector<64x256xf32>, vector<8x256xf32> -> vector<8x256xf32>
    %10 = arith.addf %4, %9 : vector<8x256xf32>
    %c0_11 = arith.constant 0 : index
    %c0_12 = arith.constant 0 : index
    %c0_13 = arith.constant 0 : index
    %11 = vector.load %arg5[%c0_11, %c0_12, %c0_13] : memref<1x8x64xf32, #tpu.memory_space<vmem>>, vector<1x8x64xf32>
    %12 = vector.shape_cast %11 : vector<1x8x64xf32> to vector<8x64xf32>
    %c2 = arith.constant 2 : index
    %c0_14 = arith.constant 0 : index
    %c0_15 = arith.constant 0 : index
    %13 = vector.load %arg2[%c2, %c0_14, %c0_15] : memref<4x64x256xf32, #tpu.memory_space<vmem>>, vector<1x64x256xf32>
    %14 = vector.shape_cast %13 : vector<1x64x256xf32> to vector<64x256xf32>
    %cst_16 = arith.constant dense<0.000000e+00> : vector<8x256xf32>
    %15 = tpu.matmul %12, %14, %cst_16 {dimension_numbers = #tpu.dot_dimension_numbers<[1], [0], [0], [1], [0, 0, 1, 1], [], []>} : vector<8x64xf32>, vector<64x256xf32>, vector<8x256xf32> -> vector<8x256xf32>
    %16 = arith.addf %10, %15 : vector<8x256xf32>
    %c0_17 = arith.constant 0 : index
    %c0_18 = arith.constant 0 : index
    %c0_19 = arith.constant 0 : index
    %17 = vector.load %arg6[%c0_17, %c0_18, %c0_19] : memref<1x8x64xf32, #tpu.memory_space<vmem>>, vector<1x8x64xf32>
    %18 = vector.shape_cast %17 : vector<1x8x64xf32> to vector<8x64xf32>
    %c3 = arith.constant 3 : index
    %c0_20 = arith.constant 0 : index
    %c0_21 = arith.constant 0 : index
    %19 = vector.load %arg2[%c3, %c0_20, %c0_21] : memref<4x64x256xf32, #tpu.memory_space<vmem>>, vector<1x64x256xf32>
    %20 = vector.shape_cast %19 : vector<1x64x256xf32> to vector<64x256xf32>
    %cst_22 = arith.constant dense<0.000000e+00> : vector<8x256xf32>
    %21 = tpu.matmul %18, %20, %cst_22 {dimension_numbers = #tpu.dot_dimension_numbers<[1], [0], [0], [1], [0, 0, 1, 1], [], []>} : vector<8x64xf32>, vector<64x256xf32>, vector<8x256xf32> -> vector<8x256xf32>
    %22 = arith.addf %16, %21 : vector<8x256xf32>
    %c0_23 = arith.constant 0 : index
    %c0_24 = arith.constant 0 : index
    %c0_25 = arith.constant 0 : index
    %23 = vector.load %arg7[%c0_23, %c0_24, %c0_25] : memref<1x8x256xf32, #tpu.memory_space<vmem>>, vector<1x8x256xf32>
    %24 = vector.shape_cast %23 : vector<1x8x256xf32> to vector<8x256xf32>
    %25 = vector.shape_cast %22 : vector<8x256xf32> to vector<1x8x256xf32>
    tpu.vector_store %arg7[%c0_23, %c0_24, %c0_25], %25 {strides = array<i32>} : memref<1x8x256xf32, #tpu.memory_space<vmem>>, vector<1x8x256xf32>,
    return
  }
  func.func @transform_0(%arg0: i32, %arg1: i32) -> (i32, i32, i32) {
    %c0_i32 = arith.constant 0 : i32
    %c0_i32_0 = arith.constant 0 : i32
    %c0_i32_1 = arith.constant 0 : i32
    %c0_i32_2 = arith.constant 0 : i32
    return %c0_i32, %c0_i32_0, %c0_i32_1 : i32, i32, i32
  }
  func.func @transform_1(%arg0: i32, %arg1: i32) -> (i32, i32, i32) {
    %c0_i32 = arith.constant 0 : i32
    %c0_i32_0 = arith.constant 0 : i32
    return %arg0, %arg1, %c0_i32 : i32, i32, i32
  }
  func.func @transform_2(%arg0: i32, %arg1: i32) -> (i32, i32, i32) {
    %c0_i32 = arith.constant 0 : i32
    %c0_i32_0 = arith.constant 0 : i32
    return %arg0, %arg1, %c0_i32 : i32, i32, i32
  }
  func.func @transform_3(%arg0: i32, %arg1: i32) -> (i32, i32, i32) {
    %c0_i32 = arith.constant 0 : i32
    %c0_i32_0 = arith.constant 0 : i32
    return %arg0, %arg1, %c0_i32 : i32, i32, i32
  }
  func.func @transform_4(%arg0: i32, %arg1: i32) -> (i32, i32, i32) {
    %c0_i32 = arith.constant 0 : i32
    %c0_i32_0 = arith.constant 0 : i32
    return %arg0, %arg1, %c0_i32 : i32, i32, i32
  }
  func.func @transform_5(%arg0: i32, %arg1: i32) -> (i32, i32, i32) {
    %c0_i32 = arith.constant 0 : i32
    %c0_i32_0 = arith.constant 0 : i32
    return %arg0, %arg1, %c0_i32 : i32, i32, i32
  }
}

module attributes {stable_mosaic.version = 11 : i64} {
  func.func @_fm_copy_kernel(%arg0: i32, %arg1: i32, %arg2: memref<2x16x256xf32, #tpu.memory_space<any>>, %arg3: memref<1x8x256xf32, #tpu.memory_space<vmem>>, %arg4: memref<1x8x256xf32, #tpu.memory_space<vmem>>) attributes {dimension_semantics = [#tpu.dimension_semantics<parallel>, #tpu.dimension_semantics<parallel>], iteration_bounds = array<i64: 2, 1>, scalar_prefetch = 0 : i64, scratch_operands = 0 : i64, tpu.core_type = #tpu.core_type<tc>, window_params = [{}, {transform_indices = @transform_1, window_bounds = array<i64: 1, 8, 256>}, {transform_indices = @transform_2, window_bounds = array<i64: 1, 8, 256>}]} {
    %c0 = arith.constant 0 : index
    %c0_0 = arith.constant 0 : index
    %c0_1 = arith.constant 0 : index
    %0 = vector.load %arg3[%c0, %c0_0, %c0_1] : memref<1x8x256xf32, #tpu.memory_space<vmem>>, vector<1x8x256xf32>
    %1 = vector.shape_cast %0 : vector<1x8x256xf32> to vector<8x256xf32>
    %c0_2 = arith.constant 0 : index
    %c0_3 = arith.constant 0 : index
    %c0_4 = arith.constant 0 : index
    %2 = vector.load %arg4[%c0_2, %c0_3, %c0_4] : memref<1x8x256xf32, #tpu.memory_space<vmem>>, vector<1x8x256xf32>
    %3 = vector.shape_cast %2 : vector<1x8x256xf32> to vector<8x256xf32>
    %4 = vector.shape_cast %1 : vector<8x256xf32> to vector<1x8x256xf32>
    tpu.vector_store %arg4[%c0_2, %c0_3, %c0_4], %4 {strides = array<i32>} : memref<1x8x256xf32, #tpu.memory_space<vmem>>, vector<1x8x256xf32>,
    return
  }
  func.func @transform_1(%arg0: i32, %arg1: i32) -> (i32, i32, i32) {
    %c0_i32 = arith.constant 0 : i32
    %c0_i32_0 = arith.constant 0 : i32
    return %arg0, %arg1, %c0_i32 : i32, i32, i32
  }
  func.func @transform_2(%arg0: i32, %arg1: i32) -> (i32, i32, i32) {
    %c1_i32 = arith.constant 1 : i32
    %0 = arith.addi %c1_i32, %arg1 : i32
    %c0_i32 = arith.constant 0 : i32
    %c0_i32_0 = arith.constant 0 : i32
    return %arg0, %0, %c0_i32 : i32, i32, i32
  }
}

</mosaic_0001>

<bundles_post_ra>
// kernel: my_upsampling_idwt.3
= control target key start
LH: loop header
LB: loop body
LE: loop exit
PB: predicated region body
PF: predicated region fallthrough
CT: control target
= control target key end

     0   :  { %s337_s9 = smov 0   ;;  %s339_s10 = smov 0   ;;  %s358_s0 = inlined_call_operand.vmem [shape: f32[2,16,256], index: 0, kind: input, shape index: {}, may-alias: {0,2}]   ;;  %s359_s1 = inlined_call_operand.vmem [shape: f32[2,8,256], index: 1, kind: input, shape index: {}]   ;;  %s360_s2 = inlined_call_operand.vmem [shape: f32[2,16,256], index: 2, kind: output, shape index: {}, may-alias: {0,2}]  }
   0x1   :  { %s341_s11 = smov 0  }
   0x2 LB: > { %s24_s0 = sadd.s32 1, %s316_s10  ;;  %p263_p0 = scmp.ge.s32.totalorder %s320_s11, 1  ;;  %s320_s11 = sphi %s341_s11, %s12_s11   ;;  %s316_s10 = sphi %s339_s10, %s362_s10   ;;  %s312_s9 = sphi %s337_s9, %s361_s9  }
   0x3   : > { %p26_p1 = scmp.ge.s32.totalorder %s24_s0, 2  ;;  %p110_p2 = scmp.lt.s32.totalorder %s320_s11, 3 }
   0x5   : > { %s364_s0 = smov (%p26_p1, %s24_s0), 0  ;;  %p111_p3 = pnand %p263_p0, %p110_p2 }
   0x6   : > { %p139_p4 = scmp.lt.s32.totalorder (!%p111_p3), %s312_s9, 1 }
   0x7   : > { %114 = sbr.rel (%p111_p3) target bundleno = 18 (0x12), region = 24 }
   0xc   : > { %s366_s9 = smov (!%p139_p4, %s312_s9), 1 }
   0xd   : > { %s270_s12 = sshll.u32 %s366_s9, 4  ;;  %s273_s13 = sshll.u32 %s366_s9, 5 }
   0xe   : > { %s147_s16 = scalar_lea.vmem %s359_s1, %s270_s12  ;;  %s272_s17 = sadd.s32 16, %s273_s13 }
   0xf   : > { %s157_s20 = scalar_lea.vmem %s360_s2, %s272_s17  ;;  %v159_v0 = vld [vmem:[%s147_s16] sm:$0xff]  ;;  %v160_v1 = vld [vmem:[%s147_s16 + $0x8] sm:$0xff] }
  0x10   : > { %161 = vst [vmem:[%s157_s20] sm:$0xff] %v159_v0 }
  0x11   : > { %162 = vst [vmem:[%s157_s20 + $0x8] sm:$0xff] %v160_v1 }
  0x12 PF: > { %s12_s11 = sadd.s32 1, %s320_s11   ;;  %s361_s9 = smov %s316_s10 }
  0x13   : > { %p9_p5 = scmp.ge.s32.totalorder %s12_s11, 4   ;;  %s362_s10 = smov %s364_s0 }
  0x15   :  { %11 = sbr.rel (!%p9_p5) target bundleno = 2 (0x2), region = 54 }

// kernel: my_upsampling_idwt.2
= control target key start
LH: loop header
LB: loop body
LE: loop exit
PB: predicated region body
PF: predicated region fallthrough
CT: control target
= control target key end

     0   :  { %10 = vsyncpa [#allocation3], 0  ;;  %s902_s18 = smov 0   ;;  %s904_s19 = smov 0   ;;  %s972_s0 = inlined_call_operand.hbm [shape: f32[4,64,256], index: 0, kind: input, shape index: {}]   ;;  %s973_s1 = inlined_call_operand.vmem [shape: f32[2,8,64], index: 1, kind: input, shape index: {}]   ;;  %s974_s2 = inlined_call_operand.vmem [shape: f32[2,8,64], index: 2, kind: input, shape index: {}]   ;;  %s975_s3 = inlined_call_operand.vmem [shape: f32[2,8,64], index: 3, kind: input, shape index: {}]   ;;  %s976_s4 = inlined_call_operand.vmem [shape: f32[2,8,64], index: 4, kind: input, shape index: {}]   ;;  %s977_s5 = inlined_call_operand.vmem [shape: f32[2,16,256], index: 5, kind: output, shape index: {}]  }
   0x1   :  { %s906_s20 = smov 0  }
   0x2 LB: > { %s750_s21 = sadd.s32 4294967295, %s867_s20   ;;  %s28_s22 = sadd.s32 1, %s863_s19  ;;  %s867_s20 = sphi %s906_s20, %s16_s20   ;;  %s863_s19 = sphi %s904_s19, %s979_s19   ;;  %s859_s18 = sphi %s902_s18, %s978_s18  }
   0x3   : > { %p30_p0 = scmp.ge.s32.totalorder %s28_s22, 2  ;;  %p752_p1 = scmp.ge.s32.totalorder %s867_s20, 1 }
   0x4   : > { %p194_p2 = scmp.lt.s32.totalorder %s867_s20, 3  ;;  %p782_p4 = scmp.eq.s32.totalorder %s750_s21, 0 }
   0x5   : > { %s981_s22 = smov (%p30_p0, %s28_s22), 0  ;;  %s205_s25 = sshll.u32 %s972_s0, 4  ;;  %s206_s25 = int_to_ptr.hbm [resolvable:$true] %s205_s25 }
   0x6   : > { %p195_p3 = pnand %p752_p1, %p194_p2  ;;  %s869_s26 = smov [#allocation2]  }
   0x7   : > { %s207_s27 = sshll.u32 %s869_s26, 4  ;;  %s870_s28 = smov 256   ;;  %s208_s27 = int_to_ptr.vmem [resolvable:$true] %s207_s27 }
   0x8   : > { %p778_p5 = pneg %p195_p3  ;;  %s871_s29 = smov 16  }
   0x9   : > { %263 = sbr.rel (%p195_p3) target bundleno = 187 (0xbb), region = 40 }
   0xa   : > { %p779_p6 = pnand %p782_p4, %p778_p5 }
   0xc   : > { %781 = dma.hbm_to_vmem [thread:$0]  (!%p779_p6), %s206_s25, 8192, %s208_s27, [#allocation3], %s870_s28, %s870_s28, %s871_s29  }
   0xe   : > { %854 = dma.done.wait (%p782_p4), [#allocation3], 8192  }
   0xf   : > { %856 = vsyncadd (%p782_p4), [#allocation3], 4294959104  ;;  %v389_v0 = vld [vmem:[#allocation2 + $0xf0] sm:$0xff]  ;;  %v390_v1 = vld [vmem:[#allocation2 + $0xf8] sm:$0xff]  ;;  %p319_p7 = scmp.lt.s32.totalorder %s859_s18, 1  ;;  %vm391_vm0 = vcmask 523264  }
  0x10   : > { %v371_v2 = vld [vmem:[#allocation2 + $0x70] sm:$0xff]  ;;  %403 = vmatpush.msra.mxu0 %v389_v0  ;;  %423 = vmatpush.msra.mxu1 %v390_v1  ;;  %v372_v3 = vld [vmem:[#allocation2 + $0x78] sm:$0xff]  ;;  %v387_v4 = vld [vmem:[#allocation2 + $0xe0] sm:$0xff] }
  0x11   : > { %v388_v5 = vld [vmem:[#allocation2 + $0xe8] sm:$0xff]  ;;  %446 = vmatpush.msra.mxu2 %v371_v2  ;;  %466 = vmatpush.msra.mxu3 %v372_v3  ;;  %v369_v6 = vld [vmem:[#allocation2 + $0x60] sm:$0xff]  ;;  %v385_v8 = vld [vmem:[#allocation2 + $0xd0] sm:$0xff]  ;;  %s983_s18 = smov (!%p319_p7, %s859_s18), 1 }
  0x12   : > { %v370_v7 = vld [vmem:[#allocation2 + $0x68] sm:$0xff]  ;;  %404 = vmatpush.msra.mxu0 %v387_v4  ;;  %424 = vmatpush.msra.mxu1 %v388_v5  ;;  %v386_v9 = vld [vmem:[#allocation2 + $0xd8] sm:$0xff]  ;;  %v367_v10 = vld [vmem:[#allocation2 + $0x50] sm:$0xff]  ;;  %s933_s30 = sshll.u32 %s983_s18, 3  ;;  %s773_s21 = sshll.u32 %s983_s18, 5 }
  0x13   : > { %v368_v11 = vld [vmem:[#allocation2 + $0x58] sm:$0xff]  ;;  %447 = vmatpush.msra.mxu2 %v369_v6  ;;  %467 = vmatpush.msra.mxu3 %v370_v7  ;;  %v383_v12 = vld [vmem:[#allocation2 + $0xc0] sm:$0xff]  ;;  %v384_v13 = vld [vmem:[#allocation2 + $0xc8] sm:$0xff]  ;;  %s325_s8 = scalar_lea.vmem %s973_s1, %s933_s30  ;;  %s332_s11 = scalar_lea.vmem %s974_s2, %s933_s30 }
  0x14   : > { %405 = vmatpush.msra.mxu0 %v385_v8  ;;  %425 = vmatpush.msra.mxu1 %v386_v9  ;;  %v365_v14 = vld [vmem:[#allocation2 + $0x40] sm:$0xff]  ;;  %v366_v15 = vld [vmem:[#allocation2 + $0x48] sm:$0xff]  ;;  %v381_v16 = vld [vmem:[#allocation2 + $0xb0] sm:$0xff]  ;;  %s339_s14 = scalar_lea.vmem %s975_s3, %s933_s30  ;;  %s346_s17 = scalar_lea.vmem %s976_s4, %s933_s30 }
  0x15   : > { %448 = vmatpush.msra.mxu2 %v367_v10  ;;  %468 = vmatpush.msra.mxu3 %v368_v11  ;;  %v382_v17 = vld [vmem:[#allocation2 + $0xb8] sm:$0xff]  ;;  %v363_v18 = vld [vmem:[#allocation2 + $0x30] sm:$0xff]  ;;  %v379_v20 = vld [vmem:[#allocation2 + $0xa0] sm:$0xff]  ;;  %s355_s25 = scalar_lea.vmem %s977_s5, %s773_s21 }
  0x16   : > { %406 = vmatpush.msra.mxu0 %v383_v12  ;;  %426 = vmatpush.msra.mxu1 %v384_v13  ;;  %v364_v19 = vld [vmem:[#allocation2 + $0x38] sm:$0xff]  ;;  %v380_v21 = vld [vmem:[#allocation2 + $0xa8] sm:$0xff]  ;;  %v361_v22 = vld [vmem:[#allocation2 + $0x20] sm:$0xff] }
  0x17   : > { %449 = vmatpush.msra.mxu2 %v365_v14  ;;  %469 = vmatpush.msra.mxu3 %v366_v15  ;;  %v362_v23 = vld [vmem:[#allocation2 + $0x28] sm:$0xff]  ;;  %v377_v24 = vld [vmem:[#allocation2 + $0x90] sm:$0xff]  ;;  %v378_v25 = vld [vmem:[#allocation2 + $0x98] sm:$0xff] }
  0x18   : > { %407 = vmatpush.msra.mxu0 %v381_v16  ;;  %427 = vmatpush.msra.mxu1 %v382_v17  ;;  %v359_v26 = vld [vmem:[#allocation2 + $0x10] sm:$0xff]  ;;  %v360_v27 = vld [vmem:[#allocation2 + $0x18] sm:$0xff]  ;;  %v375_v28 = vld [vmem:[#allocation2 + $0x80] sm:$0xff] }
  0x19   : > { %450 = vmatpush.msra.mxu2 %v363_v18  ;;  %470 = vmatpush.msra.mxu3 %v364_v19  ;;  %v376_v29 = vld [vmem:[#allocation2 + $0x88] sm:$0xff]  ;;  %v357_v30 = vld [vmem:[#allocation2] sm:$0xff]  ;;  %v494_v32 = vld [vmem:[#allocation2 + $0x170] sm:$0xff] }
  0x1a   : > { %408 = vmatpush.msra.mxu0 %v379_v20  ;;  %428 = vmatpush.msra.mxu1 %v380_v21  ;;  %v358_v31 = vld [vmem:[#allocation2 + $0x8] sm:$0xff]  ;;  %v495_v33 = vld [vmem:[#allocation2 + $0x178] sm:$0xff]  ;;  %v557_v34 = vld [vmem:[#allocation2 + $0x1f0] sm:$0xff] }
  0x1b   : > { %451 = vmatpush.msra.mxu2 %v361_v22  ;;  %471 = vmatpush.msra.mxu3 %v362_v23  ;;  %v558_v35 = vld [vmem:[#allocation2 + $0x1f8] sm:$0xff]  ;;  %v492_v36 = vld [vmem:[#allocation2 + $0x160] sm:$0xff]  ;;  %v493_v37 = vld [vmem:[#allocation2 + $0x168] sm:$0xff] }
  0x1c   : > { %409 = vmatpush.msra.mxu0 %v377_v24  ;;  %429 = vmatpush.msra.mxu1 %v378_v25  ;;  %v555_v38 = vld [vmem:[#allocation2 + $0x1e0] sm:$0xff]  ;;  %v556_v39 = vld [vmem:[#allocation2 + $0x1e8] sm:$0xff]  ;;  %v490_v40 = vld [vmem:[#allocation2 + $0x150] sm:$0xff] }
  0x1d   : > { %452 = vmatpush.msra.mxu2 %v359_v26  ;;  %472 = vmatpush.msra.mxu3 %v360_v27  ;;  %v491_v41 = vld [vmem:[#allocation2 + $0x158] sm:$0xff]  ;;  %v553_v42 = vld [vmem:[#allocation2 + $0x1d0] sm:$0xff]  ;;  %v356_v44 = vld [vmem:[%s325_s8] sm:$0xff] }
  0x1e   : > { %410 = vmatpush.msra.mxu0 %v375_v28  ;;  %430 = vmatpush.msra.mxu1 %v376_v29  ;;  %v554_v43 = vld [vmem:[#allocation2 + $0x1d8] sm:$0xff]  ;;  %v488_v45 = vld [vmem:[#allocation2 + $0x140] sm:$0xff]  ;;  %v489_v46 = vld [vmem:[#allocation2 + $0x148] sm:$0xff] }
  0x1f   : > { %453 = vmatpush.msra.mxu2 %v357_v30  ;;  %473 = vmatpush.msra.mxu3 %v358_v31  ;;  %v551_v47 = vld [vmem:[#allocation2 + $0x1c0] sm:$0xff]  ;;  %v552_v48 = vld [vmem:[#allocation2 + $0x1c8] sm:$0xff]  ;;  %v486_v50 = vld [vmem:[#allocation2 + $0x130] sm:$0xff] }
  0x20   : > { %507 = vmatpush.msrb.mxu0 %v494_v32  ;;  %527 = vmatpush.msrb.mxu1 %v495_v33  ;;  %v373_v49 = vld [vmem:[%s332_s11] sm:$0xff]  ;;  %v487_v51 = vld [vmem:[#allocation2 + $0x138] sm:$0xff]  ;;  %v549_v52 = vld [vmem:[#allocation2 + $0x1b0] sm:$0xff] }
  0x21   : > { %570 = vmatpush.msrb.mxu2 %v557_v34  ;;  %590 = vmatpush.msrb.mxu3 %v558_v35  ;;  %v550_v53 = vld [vmem:[#allocation2 + $0x1b8] sm:$0xff]  ;;  %v484_v54 = vld [vmem:[#allocation2 + $0x120] sm:$0xff]  ;;  %v485_v55 = vld [vmem:[#allocation2 + $0x128] sm:$0xff] }
  0x22   : > { %508 = vmatpush.msrb.mxu0 %v492_v36  ;;  %528 = vmatpush.msrb.mxu1 %v493_v37  ;;  %v547_v56 = vld [vmem:[#allocation2 + $0x1a0] sm:$0xff]  ;;  %v548_v57 = vld [vmem:[#allocation2 + $0x1a8] sm:$0xff]  ;;  %v482_v58 = vld [vmem:[#allocation2 + $0x110] sm:$0xff] }
  0x23   : > { %571 = vmatpush.msrb.mxu2 %v555_v38  ;;  %591 = vmatpush.msrb.mxu3 %v556_v39  ;;  %v483_v59 = vld [vmem:[#allocation2 + $0x118] sm:$0xff]  ;;  %v545_v60 = vld [vmem:[#allocation2 + $0x190] sm:$0xff]  ;;  %v480_v62 = vld [vmem:[#allocation2 + $0x100] sm:$0xff] }
  0x24   : > { %509 = vmatpush.msrb.mxu0 %v490_v40  ;;  %529 = vmatpush.msrb.mxu1 %v491_v41  ;;  %v546_v61 = vld [vmem:[#allocation2 + $0x198] sm:$0xff]  ;;  %v481_v63 = vld [vmem:[#allocation2 + $0x108] sm:$0xff]  ;;  %v543_v0 = vld [vmem:[#allocation2 + $0x180] sm:$0xff] }
  0x25   : > { %572 = vmatpush.msrb.mxu2 %v553_v42  ;;  %592 = vmatpush.msrb.mxu3 %v554_v43  ;;  %v544_v1 = vld [vmem:[#allocation2 + $0x188] sm:$0xff]  ;;  %v478_v2 = vld [vmem:[%s339_s14] sm:$0xff] }
  0x26   : > { %765 = vmatmul.msk.f32.vlgmr.msra.gmra.mxu2 %vm391_vm0, %v356_v44  ;;  %766 = vmatmul.msk.f32.vlgmr.msra.gmra.mxu3 %vm391_vm0, %v356_v44  ;;  %v541_v3 = vld [vmem:[%s346_s17] sm:$0xff] }
  0x27   : > { %510 = vmatpush.msrb.mxu0 %v488_v45  ;;  %530 = vmatpush.msrb.mxu1 %v489_v46 }
  0x28   : > { %573 = vmatpush.msrb.mxu2 %v551_v47  ;;  %593 = vmatpush.msrb.mxu3 %v552_v48 }
  0x29   : > { %763 = vmatmul.msk.f32.vlgmr.msra.gmra.mxu0 %vm391_vm0, %v373_v49  ;;  %764 = vmatmul.msk.f32.vlgmr.msra.gmra.mxu1 %vm391_vm0, %v373_v49 }
  0x2a   : > { %511 = vmatpush.msrb.mxu0 %v486_v50  ;;  %531 = vmatpush.msrb.mxu1 %v487_v51 }
  0x2b   : > { %574 = vmatpush.msrb.mxu2 %v549_v52  ;;  %594 = vmatpush.msrb.mxu3 %v550_v53 }
  0x2c   : > { %512 = vmatpush.msrb.mxu0 %v484_v54  ;;  %532 = vmatpush.msrb.mxu1 %v485_v55 }
  0x2d   : > { %575 = vmatpush.msrb.mxu2 %v547_v56  ;;  %595 = vmatpush.msrb.mxu3 %v548_v57 }
  0x2e   : > { %513 = vmatpush.msrb.mxu0 %v482_v58  ;;  %533 = vmatpush.msrb.mxu1 %v483_v59 }
  0x2f   : > { %576 = vmatpush.msrb.mxu2 %v545_v60  ;;  %596 = vmatpush.msrb.mxu3 %v546_v61 }
  0x30   : > { %514 = vmatpush.msrb.mxu0 %v480_v62  ;;  %534 = vmatpush.msrb.mxu1 %v481_v63 }
  0x31   : > { %577 = vmatpush.msrb.mxu2 %v543_v0  ;;  %597 = vmatpush.msrb.mxu3 %v544_v1 }
  0x32   : > { %767 = vmatmul.msk.f32.vlgmr.msrb.gmra.mxu0 %vm391_vm0, %v478_v2  ;;  %768 = vmatmul.msk.f32.vlgmr.msrb.gmra.mxu1 %vm391_vm0, %v478_v2 }
  0x33   : > { %769 = vmatmul.msk.f32.vlgmr.msrb.gmra.mxu2 %vm391_vm0, %v541_v3  ;;  %770 = vmatmul.msk.f32.vlgmr.msrb.gmra.mxu3 %vm391_vm0, %v541_v3 }
  0xa6   : > { %v412_v4 = vpop.f32.mrf.mxu0  ;;  %v432_v5 = vpop.f32.mrf.mxu1 }
  0xa9   : > { %v455_v6 = vpop.f32.mrf.mxu2  ;;  %v475_v7 = vpop.f32.mrf.mxu3 }
  0xaa   : > { %v456_v10 = vadd.f32 %v455_v6, %v412_v4  ;;  %v476_v11 = vadd.f32 %v475_v7, %v432_v5 }
  0xaf   : > { %v516_v8 = vpop.f32.mrf.mxu0  ;;  %v536_v9 = vpop.f32.mrf.mxu1 }
  0xb0   : > { %v539_v12 = vadd.f32 %v516_v8, %v456_v10  ;;  %v540_v13 = vadd.f32 %v536_v9, %v476_v11 }
  0xb6   : > { %v579_v14 = vpop.f32.mrf.mxu2  ;;  %v599_v15 = vpop.f32.mrf.mxu3 }
  0xb7   : > { %v602_v16 = vadd.f32 %v579_v14, %v539_v12  ;;  %v603_v17 = vadd.f32 %v599_v15, %v540_v13 }
  0xb9   : > { %604 = vst [vmem:[%s355_s25] sm:$0xff] %v602_v16 }
  0xba   : > { %605 = vst [vmem:[%s355_s25 + $0x8] sm:$0xff] %v603_v17 }
  0xbb PF: > { %s16_s20 = sadd.s32 1, %s867_s20   ;;  %s978_s18 = smov %s863_s19 }
  0xbc   : > { %p13_p8 = scmp.ge.s32.totalorder %s16_s20, 4   ;;  %s979_s19 = smov %s981_s22 }
  0xbe   :  { %15 = sbr.rel (!%p13_p8) target bundleno = 2 (0x2), region = 87 }
  0xc3   :  { %635 = vsyncpa [#allocation3], 1 }
  0xc4   :  { %637 = vsyncpa [#allocation3 + $0x1], 1 }

</bundles_post_ra>
